<compile_context>
chip_gen: v6e
topology: v6e:2x2x1
jax: 0.10.0
libtpu: 0.0.40
codegen_flags: <defaults>
</compile_context>

<pallas_src>
import functools

import jax
import jax.numpy as jnp
from jax.experimental import pallas as pl
from jax.experimental.pallas import tpu as pltpu

EPS = 1e-5
LANE = 128
SUBLANE = 8


def _round_up(x, m):
    return (x + m - 1) // m * m


# --------------------------------------------------------------------------- #
# Kernel
# --------------------------------------------------------------------------- #
def bottleneck_kernel(x_ref, w1_ref, g1_ref, b1_ref,
                      w2_ref, g2_ref, b2_ref,
                      w3_ref, g3_ref, b3_ref,
                      o_ref, *, seq_len):
    x = x_ref[...]                       # (M, Cin_p) float32, M = N * L
    m_rows = x.shape[0]
    inv_m = 1.0 / m_rows                 # static Python float

    def bn(h, gamma, beta):
        # One-pass train-mode BatchNorm over the (N*L) row axis, biased var.
        s1 = jnp.sum(h, axis=0, keepdims=True)                    # (1, C) XLU
        s2 = jnp.sum(h * h, axis=0, keepdims=True)                # (1, C) XLU
        mean = s1 * inv_m
        var = jnp.maximum(s2 * inv_m - mean * mean, 0.0)
        scale = gamma * jax.lax.rsqrt(var + EPS)                   # EUP rsqrt
        shift = beta - mean * scale
        return h * scale + shift                                   # fused a*x+b

    # ---- stage 1: 1x1 conv == one lane-dense 2D MXU matmul ---------------- #
    h = jnp.dot(x, w1_ref[...], preferred_element_type=jnp.float32)
    h = jnp.maximum(bn(h, g1_ref[...], b1_ref[...]), 0.0)

    # ---- stage 2: k=3 conv, taps fused into a single (M,3W)x(3W,W) matmul - #
    # Shifted neighbours via XLU roll; zero the rows at sequence boundaries so
    # the shift never crosses a batch boundary (== zero padding of the conv).
    rows = jax.lax.broadcasted_iota(jnp.int32, (m_rows, 1), 0)
    pos = rows % seq_len
    is_first = pos == 0
    is_last = pos == (seq_len - 1)
    h_prev = jnp.where(is_first, 0.0, pltpu.roll(h, 1, 0))            # h[l-1]
    h_next = jnp.where(is_last, 0.0, pltpu.roll(h, m_rows - 1, 0))    # h[l+1]
    cat = jnp.concatenate([h_prev, h, h_next], axis=-1)               # (M, 3W)
    h2 = jnp.dot(cat, w2_ref[...], preferred_element_type=jnp.float32)
    h2 = jnp.maximum(bn(h2, g2_ref[...], b2_ref[...]), 0.0)

    # ---- stage 3: 1x1 conv + BN ------------------------------------------- #
    h3 = jnp.dot(h2, w3_ref[...], preferred_element_type=jnp.float32)
    h3 = bn(h3, g3_ref[...], b3_ref[...])

    # ---- residual add + final ReLU (downsample is None, Cin == Cout) ------ #
    o_ref[...] = jnp.maximum(h3 + x, 0.0)


# --------------------------------------------------------------------------- #
# Wrapper: layout plumbing (NCL <-> lane-dense padded (N*L, C)) + pallas_call
# --------------------------------------------------------------------------- #
def bottleneck_forward(x_ncl, params):
    """x_ncl: (N, Cin, L) float32 (PyTorch Conv1d layout). Returns (N, Cout, L)."""
    (w1, g1, b1, w2, g2, b2, w3, g3, b3) = params
    N, Cin, L = x_ncl.shape
    width = w1.shape[0]
    Cout = w3.shape[0]
    assert Cout == Cin, "downsample=None requires inplanes == planes * 4"

    cin_p = _round_up(Cin, LANE)
    w_p = _round_up(width, LANE)
    cout_p = _round_up(Cout, LANE)
    assert cin_p == cout_p                       # residual add alignment
    M = N * L
    assert M % SUBLANE == 0, "N*L must be a multiple of 8 (sublane alignment)"

    # Activations: NCL -> NLC -> (N*L, Cin), channel-padded to 128 lanes.
    x_flat = jnp.transpose(x_ncl, (0, 2, 1)).reshape(M, Cin)
    x_pad = jnp.pad(x_flat, ((0, 0), (0, cin_p - Cin)))

    # Weights: matmul-ready (in, out), zero-padded; conv2 taps stacked along K
    # so that the single (M,3W_p)x(3W_p,W_p) matmul reproduces the 3-tap conv.
    w1_p = jnp.pad(w1.T, ((0, cin_p - Cin), (0, w_p - width)))        # (cin_p, w_p)
    w2_taps = [jnp.pad(w2[k].T, ((0, w_p - width), (0, w_p - width)))
               for k in range(3)]                                     # tap k hits h[l-1+k]
    w2_p = jnp.concatenate(w2_taps, axis=0)                           # (3*w_p, w_p)
    w3_p = jnp.pad(w3.T, ((0, w_p - width), (0, cout_p - Cout)))      # (w_p, cout_p)

    def pad_bn(v, cp):
        v = v.reshape(1, -1)
        return jnp.pad(v, ((0, 0), (0, cp - v.shape[1])))

    g1_p, b1_p = pad_bn(g1, w_p), pad_bn(b1, w_p)
    g2_p, b2_p = pad_bn(g2, w_p), pad_bn(b2, w_p)
    g3_p, b3_p = pad_bn(g3, cout_p), pad_bn(b3, cout_p)

    flops = 2 * M * (cin_p * w_p + 3 * w_p * w_p + w_p * cout_p)
    transcendentals = 2 * w_p + cout_p
    bytes_accessed = 4 * (M * cin_p + M * cout_p
                          + cin_p * w_p + 3 * w_p * w_p + w_p * cout_p
                          + 4 * w_p + 2 * cout_p)

    vmem = pl.BlockSpec(memory_space=pltpu.MemorySpace.VMEM)
    out_pad = pl.pallas_call(
        functools.partial(bottleneck_kernel, seq_len=L),
        out_shape=jax.ShapeDtypeStruct((M, cout_p), jnp.float32),
        in_specs=[vmem] * 10,
        out_specs=vmem,
        compiler_params=pltpu.CompilerParams(
            vmem_limit_bytes=32 * 1024 * 1024),
        cost_estimate=pl.CostEstimate(
            flops=int(flops),
            transcendentals=int(transcendentals),
            bytes_accessed=int(bytes_accessed)),
    )(x_pad, w1_p, g1_p, b1_p, w2_p, g2_p, b2_p, w3_p, g3_p, b3_p)

    out = out_pad[:, :Cout].reshape(N, L, Cout)
    return jnp.transpose(out, (0, 2, 1))                              # NLC -> NCL


# --------------------------------------------------------------------------- #
# Deterministic synthetic parameters (PyTorch-like raw layouts)
# --------------------------------------------------------------------------- #
def make_params(key, inplanes, planes, base_width=64, groups=1):
    width = int(planes * (base_width / 64.0)) * groups
    cout = planes * 4
    ks = jax.random.split(key, 9)
    w1 = 0.1 * jax.random.normal(ks[0], (width, inplanes), jnp.float32)   # k=1
    w2 = 0.1 * jax.random.normal(ks[1], (3, width, width), jnp.float32)   # (tap, out, in)
    w3 = 0.1 * jax.random.normal(ks[2], (cout, width), jnp.float32)       # k=1
    g1 = 1.0 + 0.05 * jax.random.normal(ks[3], (width,), jnp.float32)
    b1 = 0.05 * jax.random.normal(ks[4], (width,), jnp.float32)
    g2 = 1.0 + 0.05 * jax.random.normal(ks[5], (width,), jnp.float32)
    b2 = 0.05 * jax.random.normal(ks[6], (width,), jnp.float32)
    g3 = 1.0 + 0.05 * jax.random.normal(ks[7], (cout,), jnp.float32)
    b3 = 0.05 * jax.random.normal(ks[8], (cout,), jnp.float32)
    return (w1, g1, b1, w2, g2, b2, w3, g3, b3)


# --------------------------------------------------------------------------- #
# Pure-JAX reference (ground-truth PyTorch semantics) for self-check
# --------------------------------------------------------------------------- #
def _bn_ref(h, gamma, beta):
    mean = jnp.mean(h, axis=(0, 1), keepdims=True)
    var = jnp.mean(jnp.square(h - mean), axis=(0, 1), keepdims=True)
    return (h - mean) * jax.lax.rsqrt(var + EPS) * gamma + beta


def _reference(x_ncl, params):
    (w1, g1, b1, w2, g2, b2, w3, g3, b3) = params
    x = jnp.transpose(x_ncl, (0, 2, 1))                   # (N, L, Cin)
    h = jnp.einsum('nlc,oc->nlo', x, w1)
    h = jnp.maximum(_bn_ref(h, g1, b1), 0.0)
    N, L, W = h.shape
    z = jnp.zeros((N, 1, W), h.dtype)
    hp = jnp.concatenate([z, h[:, :-1]], 1)
    hn = jnp.concatenate([h[:, 1:], z], 1)
    h2 = (jnp.einsum('nlc,oc->nlo', hp, w2[0])
          + jnp.einsum('nlc,oc->nlo', h, w2[1])
          + jnp.einsum('nlc,oc->nlo', hn, w2[2]))
    h2 = jnp.maximum(_bn_ref(h2, g2, b2), 0.0)
    h3 = _bn_ref(jnp.einsum('nlc,oc->nlo', h2, w3), g3, b3)
    return jnp.transpose(jnp.maximum(h3 + x, 0.0), (0, 2, 1))


if __name__ == "__main__":
    # Bottleneck(inplanes=16, planes=4): width=4, output channels=16 so the
    # residual add works with downsample=None.
    N, inplanes, planes, L = 2, 16, 4, 16

    key = jax.random.PRNGKey(0)
    kx, kp = jax.random.split(key)
    x = jax.random.normal(kx, (N, inplanes, L), jnp.float32)   # PyTorch NCL layout
    params = make_params(kp, inplanes, planes)

    out = jax.block_until_ready(bottleneck_forward(x, params))
    ref = _reference(x, params)

    assert out.shape == (N, planes * 4, L)
    # Slightly relaxed tolerance: kernel uses padded fused matmuls and one-pass
    # variance (mathematically identical, fp32-reordered).
    assert jnp.allclose(out, ref, atol=1e-3, rtol=1e-3), "mismatch vs reference"

    print("KERNEL_OK")
</pallas_src>

<mosaic_0001>
module attributes {stable_mosaic.version = 11 : i64} {
  func.func @bottleneck_kernel(%arg0: memref<32x128xf32, #tpu.memory_space<vmem>>, %arg1: memref<128x128xf32, #tpu.memory_space<vmem>>, %arg2: memref<1x128xf32, #tpu.memory_space<vmem>>, %arg3: memref<1x128xf32, #tpu.memory_space<vmem>>, %arg4: memref<384x128xf32, #tpu.memory_space<vmem>>, %arg5: memref<1x128xf32, #tpu.memory_space<vmem>>, %arg6: memref<1x128xf32, #tpu.memory_space<vmem>>, %arg7: memref<128x128xf32, #tpu.memory_space<vmem>>, %arg8: memref<1x128xf32, #tpu.memory_space<vmem>>, %arg9: memref<1x128xf32, #tpu.memory_space<vmem>>, %arg10: memref<32x128xf32, #tpu.memory_space<vmem>>) attributes {dimension_semantics = [], scalar_prefetch = 0 : i64, scratch_operands = 0 : i64, tpu.core_type = #tpu.core_type<tc>} {
    %c0 = arith.constant 0 : index
    %c0_0 = arith.constant 0 : index
    %0 = vector.load %arg0[%c0, %c0_0] : memref<32x128xf32, #tpu.memory_space<vmem>>, vector<32x128xf32>
    %c0_1 = arith.constant 0 : index
    %c0_2 = arith.constant 0 : index
    %1 = vector.load %arg1[%c0_1, %c0_2] : memref<128x128xf32, #tpu.memory_space<vmem>>, vector<128x128xf32>
    %cst = arith.constant dense<0.000000e+00> : vector<32x128xf32>
    %2 = tpu.matmul %0, %1, %cst {dimension_numbers = #tpu.dot_dimension_numbers<[1], [0], [0], [1], [0, 0, 1, 1], [], []>} : vector<32x128xf32>, vector<128x128xf32>, vector<32x128xf32> -> vector<32x128xf32>
    %c0_3 = arith.constant 0 : index
    %c0_4 = arith.constant 0 : index
    %3 = vector.load %arg2[%c0_3, %c0_4] : memref<1x128xf32, #tpu.memory_space<vmem>>, vector<1x128xf32>
    %c0_5 = arith.constant 0 : index
    %c0_6 = arith.constant 0 : index
    %4 = vector.load %arg3[%c0_5, %c0_6] : memref<1x128xf32, #tpu.memory_space<vmem>>, vector<1x128xf32>
    %cst_7 = arith.constant dense<0.000000e+00> : vector<128xf32>
    %5 = vector.multi_reduction <add>, %2, %cst_7 [0] : vector<32x128xf32> to vector<128xf32>
    %6 = vector.shape_cast %5 : vector<128xf32> to vector<1x128xf32>
    %7 = arith.mulf %2, %2 : vector<32x128xf32>
    %cst_8 = arith.constant dense<0.000000e+00> : vector<128xf32>
    %8 = vector.multi_reduction <add>, %7, %cst_8 [0] : vector<32x128xf32> to vector<128xf32>
    %9 = vector.shape_cast %8 : vector<128xf32> to vector<1x128xf32>
    %cst_9 = arith.constant 3.125000e-02 : f32
    %10 = vector.broadcast %cst_9 : f32 to vector<1x128xf32>
    %11 = arith.mulf %6, %10 : vector<1x128xf32>
    %cst_10 = arith.constant 3.125000e-02 : f32
    %12 = vector.broadcast %cst_10 : f32 to vector<1x128xf32>
    %13 = arith.mulf %9, %12 : vector<1x128xf32>
    %14 = arith.mulf %11, %11 : vector<1x128xf32>
    %15 = arith.subf %13, %14 : vector<1x128xf32>
    %cst_11 = arith.constant 0.000000e+00 : f32
    %16 = vector.broadcast %cst_11 : f32 to vector<1x128xf32>
    %17 = arith.maximumf %15, %16 : vector<1x128xf32>
    %cst_12 = arith.constant 9.99999974E-6 : f32
    %18 = vector.broadcast %cst_12 : f32 to vector<1x128xf32>
    %19 = arith.addf %17, %18 : vector<1x128xf32>
    %20 = math.rsqrt %19 : vector<1x128xf32>
    %21 = arith.mulf %3, %20 : vector<1x128xf32>
    %22 = arith.mulf %11, %21 : vector<1x128xf32>
    %23 = arith.subf %4, %22 : vector<1x128xf32>
    %24 = vector.broadcast %21 : vector<1x128xf32> to vector<32x128xf32>
    %25 = arith.mulf %2, %24 : vector<32x128xf32>
    %26 = vector.broadcast %23 : vector<1x128xf32> to vector<32x128xf32>
    %27 = arith.addf %25, %26 : vector<32x128xf32>
    %cst_13 = arith.constant 0.000000e+00 : f32
    %28 = vector.broadcast %cst_13 : f32 to vector<32x128xf32>
    %29 = arith.maximumf %27, %28 : vector<32x128xf32>
    %30 = tpu.iota {dimensions = array<i32: 0>} : vector<32x1xi32>
    %c16_i32 = arith.constant 16 : i32
    %c0_i32 = arith.constant 0 : i32
    %31 = arith.cmpi eq, %c16_i32, %c0_i32 : i32
    %c1_i32 = arith.constant 1 : i32
    %32 = arith.select %31, %c1_i32, %c16_i32 : i32
    %33 = vector.broadcast %32 : i32 to vector<32x1xi32>
    %34 = arith.remsi %30, %33 : vector<32x1xi32>
    %c0_i32_14 = arith.constant 0 : i32
    %35 = vector.broadcast %c0_i32_14 : i32 to vector<32x1xi32>
    %36 = arith.cmpi ne, %34, %35 : vector<32x1xi32>
    %c0_i32_15 = arith.constant 0 : i32
    %37 = vector.broadcast %c0_i32_15 : i32 to vector<32x1xi32>
    %38 = arith.cmpi slt, %34, %37 : vector<32x1xi32>
    %c0_i32_16 = arith.constant 0 : i32
    %39 = arith.cmpi slt, %32, %c0_i32_16 : i32
    %40 = vector.broadcast %39 : i1 to vector<32x1xi1>
    %41 = vector.broadcast %40 : vector<32x1xi1> to vector<32x1xi1>
    %42 = arith.xori %38, %41 : vector<32x1xi1>
    %43 = arith.andi %42, %36 : vector<32x1xi1>
    %44 = vector.broadcast %32 : i32 to vector<32x1xi32>
    %45 = arith.addi %34, %44 : vector<32x1xi32>
    %46 = arith.select %43, %45, %34 : vector<32x1xi1>, vector<32x1xi32>
    %c0_i32_17 = arith.constant 0 : i32
    %47 = vector.broadcast %c0_i32_17 : i32 to vector<32x1xi32>
    %48 = arith.cmpi eq, %46, %47 : vector<32x1xi32>
    %c15_i32 = arith.constant 15 : i32
    %49 = vector.broadcast %c15_i32 : i32 to vector<32x1xi32>
    %50 = arith.cmpi eq, %46, %49 : vector<32x1xi32>
    %c1_i32_18 = arith.constant 1 : i32
    %51 = tpu.dynamic_rotate %29 by %c1_i32_18 dim 0 : vector<32x128xf32>, i32 -> vector<32x128xf32>
    %cst_19 = arith.constant 0.000000e+00 : f32
    %52 = vector.shape_cast %48 : vector<32x1xi1> to vector<32x1xi1>
    %53 = vector.broadcast %52 : vector<32x1xi1> to vector<32x128xi1>
    %54 = vector.broadcast %cst_19 : f32 to vector<32x128xf32>
    %55 = arith.select %53, %54, %51 : vector<32x128xi1>, vector<32x128xf32>
    %c31_i32 = arith.constant 31 : i32
    %56 = tpu.dynamic_rotate %29 by %c31_i32 dim 0 : vector<32x128xf32>, i32 -> vector<32x128xf32>
    %cst_20 = arith.constant 0.000000e+00 : f32
    %57 = vector.shape_cast %50 : vector<32x1xi1> to vector<32x1xi1>
    %58 = vector.broadcast %57 : vector<32x1xi1> to vector<32x128xi1>
    %59 = vector.broadcast %cst_20 : f32 to vector<32x128xf32>
    %60 = arith.select %58, %59, %56 : vector<32x128xi1>, vector<32x128xf32>
    %61 = tpu.concatenate %55, %29, %60 in 1 : vector<32x128xf32>, vector<32x128xf32>, vector<32x128xf32> -> vector<32x384xf32>
    %c0_21 = arith.constant 0 : index
    %c0_22 = arith.constant 0 : index
    %62 = vector.load %arg4[%c0_21, %c0_22] : memref<384x128xf32, #tpu.memory_space<vmem>>, vector<384x128xf32>
    %cst_23 = arith.constant dense<0.000000e+00> : vector<32x128xf32>
    %63 = tpu.matmul %61, %62, %cst_23 {dimension_numbers = #tpu.dot_dimension_numbers<[1], [0], [0], [1], [0, 0, 1, 1], [], []>} : vector<32x384xf32>, vector<384x128xf32>, vector<32x128xf32> -> vector<32x128xf32>
    %c0_24 = arith.constant 0 : index
    %c0_25 = arith.constant 0 : index
    %64 = vector.load %arg5[%c0_24, %c0_25] : memref<1x128xf32, #tpu.memory_space<vmem>>, vector<1x128xf32>
    %c0_26 = arith.constant 0 : index
    %c0_27 = arith.constant 0 : index
    %65 = vector.load %arg6[%c0_26, %c0_27] : memref<1x128xf32, #tpu.memory_space<vmem>>, vector<1x128xf32>
    %cst_28 = arith.constant dense<0.000000e+00> : vector<128xf32>
    %66 = vector.multi_reduction <add>, %63, %cst_28 [0] : vector<32x128xf32> to vector<128xf32>
    %67 = vector.shape_cast %66 : vector<128xf32> to vector<1x128xf32>
    %68 = arith.mulf %63, %63 : vector<32x128xf32>
    %cst_29 = arith.constant dense<0.000000e+00> : vector<128xf32>
    %69 = vector.multi_reduction <add>, %68, %cst_29 [0] : vector<32x128xf32> to vector<128xf32>
    %70 = vector.shape_cast %69 : vector<128xf32> to vector<1x128xf32>
    %cst_30 = arith.constant 3.125000e-02 : f32
    %71 = vector.broadcast %cst_30 : f32 to vector<1x128xf32>
    %72 = arith.mulf %67, %71 : vector<1x128xf32>
    %cst_31 = arith.constant 3.125000e-02 : f32
    %73 = vector.broadcast %cst_31 : f32 to vector<1x128xf32>
    %74 = arith.mulf %70, %73 : vector<1x128xf32>
    %75 = arith.mulf %72, %72 : vector<1x128xf32>
    %76 = arith.subf %74, %75 : vector<1x128xf32>
    %cst_32 = arith.constant 0.000000e+00 : f32
    %77 = vector.broadcast %cst_32 : f32 to vector<1x128xf32>
    %78 = arith.maximumf %76, %77 : vector<1x128xf32>
    %cst_33 = arith.constant 9.99999974E-6 : f32
    %79 = vector.broadcast %cst_33 : f32 to vector<1x128xf32>
    %80 = arith.addf %78, %79 : vector<1x128xf32>
    %81 = math.rsqrt %80 : vector<1x128xf32>
    %82 = arith.mulf %64, %81 : vector<1x128xf32>
    %83 = arith.mulf %72, %82 : vector<1x128xf32>
    %84 = arith.subf %65, %83 : vector<1x128xf32>
    %85 = vector.broadcast %82 : vector<1x128xf32> to vector<32x128xf32>
    %86 = arith.mulf %63, %85 : vector<32x128xf32>
    %87 = vector.broadcast %84 : vector<1x128xf32> to vector<32x128xf32>
    %88 = arith.addf %86, %87 : vector<32x128xf32>
    %cst_34 = arith.constant 0.000000e+00 : f32
    %89 = vector.broadcast %cst_34 : f32 to vector<32x128xf32>
    %90 = arith.maximumf %88, %89 : vector<32x128xf32>
    %c0_35 = arith.constant 0 : index
    %c0_36 = arith.constant 0 : index
    %91 = vector.load %arg7[%c0_35, %c0_36] : memref<128x128xf32, #tpu.memory_space<vmem>>, vector<128x128xf32>
    %cst_37 = arith.constant dense<0.000000e+00> : vector<32x128xf32>
    %92 = tpu.matmul %90, %91, %cst_37 {dimension_numbers = #tpu.dot_dimension_numbers<[1], [0], [0], [1], [0, 0, 1, 1], [], []>} : vector<32x128xf32>, vector<128x128xf32>, vector<32x128xf32> -> vector<32x128xf32>
    %c0_38 = arith.constant 0 : index
    %c0_39 = arith.constant 0 : index
    %93 = vector.load %arg8[%c0_38, %c0_39] : memref<1x128xf32, #tpu.memory_space<vmem>>, vector<1x128xf32>
    %c0_40 = arith.constant 0 : index
    %c0_41 = arith.constant 0 : index
    %94 = vector.load %arg9[%c0_40, %c0_41] : memref<1x128xf32, #tpu.memory_space<vmem>>, vector<1x128xf32>
    %cst_42 = arith.constant dense<0.000000e+00> : vector<128xf32>
    %95 = vector.multi_reduction <add>, %92, %cst_42 [0] : vector<32x128xf32> to vector<128xf32>
    %96 = vector.shape_cast %95 : vector<128xf32> to vector<1x128xf32>
    %97 = arith.mulf %92, %92 : vector<32x128xf32>
    %cst_43 = arith.constant dense<0.000000e+00> : vector<128xf32>
    %98 = vector.multi_reduction <add>, %97, %cst_43 [0] : vector<32x128xf32> to vector<128xf32>
    %99 = vector.shape_cast %98 : vector<128xf32> to vector<1x128xf32>
    %cst_44 = arith.constant 3.125000e-02 : f32
    %100 = vector.broadcast %cst_44 : f32 to vector<1x128xf32>
    %101 = arith.mulf %96, %100 : vector<1x128xf32>
    %cst_45 = arith.constant 3.125000e-02 : f32
    %102 = vector.broadcast %cst_45 : f32 to vector<1x128xf32>
    %103 = arith.mulf %99, %102 : vector<1x128xf32>
    %104 = arith.mulf %101, %101 : vector<1x128xf32>
    %105 = arith.subf %103, %104 : vector<1x128xf32>
    %cst_46 = arith.constant 0.000000e+00 : f32
    %106 = vector.broadcast %cst_46 : f32 to vector<1x128xf32>
    %107 = arith.maximumf %105, %106 : vector<1x128xf32>
    %cst_47 = arith.constant 9.99999974E-6 : f32
    %108 = vector.broadcast %cst_47 : f32 to vector<1x128xf32>
    %109 = arith.addf %107, %108 : vector<1x128xf32>
    %110 = math.rsqrt %109 : vector<1x128xf32>
    %111 = arith.mulf %93, %110 : vector<1x128xf32>
    %112 = arith.mulf %101, %111 : vector<1x128xf32>
    %113 = arith.subf %94, %112 : vector<1x128xf32>
    %114 = vector.broadcast %111 : vector<1x128xf32> to vector<32x128xf32>
    %115 = arith.mulf %92, %114 : vector<32x128xf32>
    %116 = vector.broadcast %113 : vector<1x128xf32> to vector<32x128xf32>
    %117 = arith.addf %115, %116 : vector<32x128xf32>
    %118 = arith.addf %117, %0 : vector<32x128xf32>
    %cst_48 = arith.constant 0.000000e+00 : f32
    %119 = vector.broadcast %cst_48 : f32 to vector<32x128xf32>
    %120 = arith.maximumf %118, %119 : vector<32x128xf32>
    %c0_49 = arith.constant 0 : index
    %c0_50 = arith.constant 0 : index
    %121 = vector.load %arg10[%c0_49, %c0_50] : memref<32x128xf32, #tpu.memory_space<vmem>>, vector<32x128xf32>
    tpu.vector_store %arg10[%c0_49, %c0_50], %120 {strides = array<i32>} : memref<32x128xf32, #tpu.memory_space<vmem>>, vector<32x128xf32>,
    return
  }
}

</mosaic_0001>

<bundles_post_ra>
// kernel: tpu_custom_call.1
= control target key start
LH: loop header
LB: loop body
LE: loop exit
PB: predicated region body
PF: predicated region fallthrough
CT: control target
= control target key end

     0   :  { %15 = vsyncpa [#allocation3], 0  ;;  %s1329_s0 = inlined_call_operand.hbm [shape: f32[32,128], index: 0, kind: input, shape index: {}]   ;;  %s1330_s1 = inlined_call_operand.hbm [shape: f32[128,128], index: 1, kind: input, shape index: {}]   ;;  %s1331_s2 = inlined_call_operand.vmem [shape: f32[1,128], index: 2, kind: input, shape index: {}]   ;;  %s1332_s3 = inlined_call_operand.vmem [shape: f32[1,128], index: 3, kind: input, shape index: {}]   ;;  %s1333_s4 = inlined_call_operand.hbm [shape: f32[384,128], index: 4, kind: input, shape index: {}]   ;;  %s1334_s5 = inlined_call_operand.vmem [shape: f32[1,128], index: 5, kind: input, shape index: {}]   ;;  %s1335_s6 = inlined_call_operand.vmem [shape: f32[1,128], index: 6, kind: input, shape index: {}]   ;;  %s1336_s7 = inlined_call_operand.hbm [shape: f32[128,128], index: 7, kind: input, shape index: {}]   ;;  %s1337_s8 = inlined_call_operand.vmem [shape: f32[1,128], index: 8, kind: input, shape index: {}]   ;;  %s1338_s9 = inlined_call_operand.vmem [shape: f32[1,128], index: 9, kind: input, shape index: {}]   ;;  %s1339_s10 = inlined_call_operand.hbm [shape: f32[32,128], index: 10, kind: output, shape index: {}]  }
   0x1   :  { %16 = vsyncpa [#allocation6], 0 }
   0x2   :  { %17 = vsyncpa [#allocation9], 0 }
   0x3   :  { %18 = vsyncpa [#allocation4], 0  ;;  %s1170_s13 = smov [#allocation5]   ;;  %s1171_s15 = smov [#allocation2]  }
   0x4   :  { %s36_s14 = sshll.u32 %s1170_s13, 4  ;;  %s24_s16 = sshll.u32 %s1171_s15, 4  ;;  %s37_s14 = int_to_ptr.vmem [resolvable:$true] %s36_s14  ;;  %s25_s16 = int_to_ptr.vmem [resolvable:$true] %s24_s16 }
   0x5   :  { %s1070_s17 = scalar_lea.vmem %s37_s14, 2048  ;;  %p1075_p1 = scmp.lt.s32.totalorder %s37_s14, %s37_s14 }
   0x6   :  { %p1071_p0 = scmp.ne.s32.totalorder %s37_s14, %s1070_s17  ;;  %p1076_p2 = scmp.lt.s32.totalorder %s1070_s17, %s1070_s17 }
   0x8   :  { %p1077_p3 = por %p1076_p2, %p1075_p1 }
   0xa   :  { %p1078_p4 = pnand %p1077_p3, %p1071_p0 }
   0xc   :  { %1081 = shalt.err (!%p1078_p4)
}
   0xd   :  { %s1172_s18 = smov 128   ;;  %s1173_s19 = smov 8  }
   0xe   :  { %42 = dma.hbm_to_vmem [thread:$0]  %s1330_s1, 2048, %s37_s14, [#allocation6], %s1172_s18, %s1172_s18, %s1173_s19  }
   0xf   :  { %s1090_s22 = scalar_lea.vmem %s25_s16, 512  ;;  %p1095_p6 = scmp.lt.s32.totalorder %s25_s16, %s25_s16 }
  0x10   :  { %p1091_p5 = scmp.ne.s32.totalorder %s25_s16, %s1090_s22  ;;  %p1096_p7 = scmp.lt.s32.totalorder %s1090_s22, %s1090_s22 }
  0x12   :  { %p1097_p8 = por %p1096_p7, %p1095_p6 }
  0x14   :  { %p1098_p9 = pnand %p1097_p8, %p1091_p5 }
  0x16   :  { %1101 = shalt.err (!%p1098_p9)
}
  0x17   :  { %30 = dma.hbm_to_vmem [thread:$0]  %s1329_s0, 512, %s25_s16, [#allocation3], %s1172_s18, %s1172_s18, %s1173_s19  }
  0x18   :  { %s1174_s25 = smov [#allocation7]   ;;  %s1175_s27 = smov [#allocation8]  }
  0x19   :  { %s52_s26 = sshll.u32 %s1174_s25, 4  ;;  %s68_s28 = sshll.u32 %s1175_s27, 4  ;;  %s53_s26 = int_to_ptr.vmem [resolvable:$true] %s52_s26  ;;  %s69_s28 = int_to_ptr.vmem [resolvable:$true] %s68_s28 }
  0x1a   :  { %s1110_s1 = scalar_lea.vmem %s53_s26, 6144  ;;  %p1115_p11 = scmp.lt.s32.totalorder %s53_s26, %s53_s26 }
  0x1b   :  { %p1111_p10 = scmp.ne.s32.totalorder %s53_s26, %s1110_s1  ;;  %p1116_p12 = scmp.lt.s32.totalorder %s1110_s1, %s1110_s1 }
  0x1d   :  { %p1117_p13 = por %p1116_p12, %p1115_p11 }
  0x1f   :  { %p1118_p0 = pnand %p1117_p13, %p1111_p10 }
  0x21   :  { %1121 = shalt.err (!%p1118_p0)
}
  0x22   :  { %58 = dma.hbm_to_vmem [thread:$0]  %s1333_s4, 6144, %s53_s26, [#allocation6], %s1172_s18, %s1172_s18, %s1173_s19  }
  0x23   :  { %s1130_s0 = scalar_lea.vmem %s69_s28, 2048  ;;  %p1135_p2 = scmp.lt.s32.totalorder %s69_s28, %s69_s28 }
  0x24   :  { %p1131_p1 = scmp.ne.s32.totalorder %s69_s28, %s1130_s0  ;;  %p1136_p3 = scmp.lt.s32.totalorder %s1130_s0, %s1130_s0 }
  0x26   :  { %p1137_p4 = por %p1136_p3, %p1135_p2 }
  0x28   :  { %p1138_p5 = pnand %p1137_p4, %p1131_p1 }
  0x2a   :  { %1141 = shalt.err (!%p1138_p5)
}
  0x2b   :  { %74 = dma.hbm_to_vmem [thread:$0]  %s1336_s7, 2048, %s69_s28, [#allocation9], %s1172_s18, %s1172_s18, %s1173_s19  }
  0x2c   :  { %1162 = dma.done.wait [#allocation3], 512  }
  0x2d   :  { %1163 = vsyncadd [#allocation3], 4294966784 }
  0x2e   :  { %1164 = dma.done.wait [#allocation6], 8192  }
  0x2f   :  { %1165 = vsyncadd [#allocation6], 4294959104 }
  0x30   :  { %1166 = dma.done.wait [#allocation9], 2048  }
  0x31   :  { %1167 = vsyncadd [#allocation9], 4294965248  ;;  %v110_v0 = vld [vmem:[#allocation5 + $0x78] sm:$0xff]  ;;  %v109_v1 = vld [vmem:[#allocation5 + $0x70] sm:$0xff] }
  0x32   :  { %935 = vmatprep.subr.mxu0 %v110_v0  ;;  %v108_v2 = vld [vmem:[#allocation5 + $0x68] sm:$0xff]  ;;  %v107_v3 = vld [vmem:[#allocation5 + $0x60] sm:$0xff]  ;;  %v106_v5 = vld [vmem:[#allocation5 + $0x58] sm:$0xff] }
  0x33   :  { %936 = vmatpush3.msra.mxu0 %v110_v0  ;;  %v1256_v4 = vld [vmem:[#allocation2] sm:$0xff]  ;;  %v105_v6 = vld [vmem:[#allocation5 + $0x50] sm:$0xff]  ;;  %v104_v7 = vld [vmem:[#allocation5 + $0x48] sm:$0xff] }
  0x34   :  { %937 = vmatprep.subr.mxu0 %v109_v1  ;;  %967 = vmatprep.mubr.f32.mxu0 %v1256_v4  ;;  %v103_v8 = vld [vmem:[#allocation5 + $0x40] sm:$0xff]  ;;  %v102_v9 = vld [vmem:[#allocation5 + $0x38] sm:$0xff]  ;;  %v101_v10 = vld [vmem:[#allocation5 + $0x30] sm:$0xff] }
  0x35   :  { %938 = vmatpush3.msra.mxu0 %v109_v1  ;;  %v100_v11 = vld [vmem:[#allocation5 + $0x28] sm:$0xff]  ;;  %v99_v12 = vld [vmem:[#allocation5 + $0x20] sm:$0xff]  ;;  %v98_v13 = vld [vmem:[#allocation5 + $0x18] sm:$0xff] }
  0x36   :  { %939 = vmatprep.subr.mxu0 %v108_v2  ;;  %v97_v14 = vld [vmem:[#allocation5 + $0x10] sm:$0xff]  ;;  %v96_v15 = vld [vmem:[#allocation5 + $0x8] sm:$0xff]  ;;  %v95_v16 = vld [vmem:[#allocation5] sm:$0xff] }
  0x37   :  { %940 = vmatpush3.msra.mxu0 %v108_v2  ;;  %v1259_v17 = vld [vmem:[#allocation2 + $0x8] sm:$0xff]  ;;  %v1261_v18 = vld [vmem:[#allocation2 + $0x10] sm:$0xff]  ;;  %v1265_v19 = vld [vmem:[#allocation2 + $0x18] sm:$0xff] }
  0x38   :  { %941 = vmatprep.subr.mxu0 %v107_v3  ;;  %v388_v20 = vld [vmem:[#allocation7 + $0xf8] sm:$0xff]  ;;  %v387_v23 = vld [vmem:[#allocation7 + $0xf0] sm:$0xff]  ;;  %v386_v26 = vld [vmem:[#allocation7 + $0xe8] sm:$0xff] }
  0x39   :  { %942 = vmatpush3.msra.mxu0 %v107_v3  ;;  %851 = vmatprep.subr.mxu1 %v388_v20  ;;  %v372_v21 = vld [vmem:[#allocation7 + $0x78] sm:$0xff]  ;;  %v371_v24 = vld [vmem:[#allocation7 + $0x70] sm:$0xff]  ;;  %v370_v27 = vld [vmem:[#allocation7 + $0x68] sm:$0xff] }
  0x3a   :  { %943 = vmatprep.subr.mxu0 %v106_v5  ;;  %v404_v22 = vld [vmem:[#allocation7 + $0x178] sm:$0xff]  ;;  %852 = vmatpush3.msra.mxu1 %v372_v21  ;;  %v403_v25 = vld [vmem:[#allocation7 + $0x170] sm:$0xff]  ;;  %v402_v28 = vld [vmem:[#allocation7 + $0x168] sm:$0xff] }
  0x3b   :  { %944 = vmatpush3.msra.mxu0 %v106_v5  ;;  %853 = vmatprep.subr.mxu1 %v387_v23  ;;  %v385_v29 = vld [vmem:[#allocation7 + $0xe0] sm:$0xff]  ;;  %v384_v32 = vld [vmem:[#allocation7 + $0xd8] sm:$0xff]  ;;  %v383_v35 = vld [vmem:[#allocation7 + $0xd0] sm:$0xff] }
  0x3c   :  { %945 = vmatprep.subr.mxu0 %v105_v6  ;;  %854 = vmatpush3.msra.mxu1 %v371_v24  ;;  %v369_v30 = vld [vmem:[#allocation7 + $0x60] sm:$0xff]  ;;  %v368_v33 = vld [vmem:[#allocation7 + $0x58] sm:$0xff]  ;;  %v367_v36 = vld [vmem:[#allocation7 + $0x50] sm:$0xff] }
  0x3d   :  { %946 = vmatpush3.msra.mxu0 %v105_v6  ;;  %855 = vmatprep.subr.mxu1 %v386_v26  ;;  %v401_v31 = vld [vmem:[#allocation7 + $0x160] sm:$0xff]  ;;  %v400_v34 = vld [vmem:[#allocation7 + $0x158] sm:$0xff]  ;;  %v399_v37 = vld [vmem:[#allocation7 + $0x150] sm:$0xff] }
  0x3e   :  { %947 = vmatprep.subr.mxu0 %v104_v7  ;;  %856 = vmatpush3.msra.mxu1 %v370_v27  ;;  %v382_v38 = vld [vmem:[#allocation7 + $0xc8] sm:$0xff]  ;;  %v381_v41 = vld [vmem:[#allocation7 + $0xc0] sm:$0xff]  ;;  %v380_v44 = vld [vmem:[#allocation7 + $0xb8] sm:$0xff] }
  0x3f   :  { %948 = vmatpush3.msra.mxu0 %v104_v7  ;;  %857 = vmatprep.subr.mxu1 %v385_v29  ;;  %v366_v39 = vld [vmem:[#allocation7 + $0x48] sm:$0xff]  ;;  %v365_v42 = vld [vmem:[#allocation7 + $0x40] sm:$0xff]  ;;  %v364_v45 = vld [vmem:[#allocation7 + $0x38] sm:$0xff] }
  0x40   :  { %949 = vmatprep.subr.mxu0 %v103_v8  ;;  %858 = vmatpush3.msra.mxu1 %v369_v30  ;;  %v398_v40 = vld [vmem:[#allocation7 + $0x148] sm:$0xff]  ;;  %v397_v43 = vld [vmem:[#allocation7 + $0x140] sm:$0xff]  ;;  %v396_v46 = vld [vmem:[#allocation7 + $0x138] sm:$0xff] }
  0x41   :  { %950 = vmatpush3.msra.mxu0 %v103_v8  ;;  %859 = vmatprep.subr.mxu1 %v384_v32  ;;  %v379_v47 = vld [vmem:[#allocation7 + $0xb0] sm:$0xff]  ;;  %v378_v50 = vld [vmem:[#allocation7 + $0xa8] sm:$0xff]  ;;  %v377_v53 = vld [vmem:[#allocation7 + $0xa0] sm:$0xff] }
  0x42   :  { %951 = vmatprep.subr.mxu0 %v102_v9  ;;  %860 = vmatpush3.msra.mxu1 %v368_v33  ;;  %v363_v48 = vld [vmem:[#allocation7 + $0x30] sm:$0xff]  ;;  %v362_v51 = vld [vmem:[#allocation7 + $0x28] sm:$0xff]  ;;  %v361_v54 = vld [vmem:[#allocation7 + $0x20] sm:$0xff] }
  0x43   :  { %952 = vmatpush3.msra.mxu0 %v102_v9  ;;  %861 = vmatprep.subr.mxu1 %v383_v35  ;;  %v395_v49 = vld [vmem:[#allocation7 + $0x130] sm:$0xff]  ;;  %v394_v52 = vld [vmem:[#allocation7 + $0x128] sm:$0xff]  ;;  %v393_v55 = vld [vmem:[#allocation7 + $0x120] sm:$0xff] }
  0x44   :  { %953 = vmatprep.subr.mxu0 %v101_v10  ;;  %862 = vmatpush3.msra.mxu1 %v367_v36  ;;  %v376_v56 = vld [vmem:[#allocation7 + $0x98] sm:$0xff]  ;;  %v375_v59 = vld [vmem:[#allocation7 + $0x90] sm:$0xff]  ;;  %v374_v62 = vld [vmem:[#allocation7 + $0x88] sm:$0xff] }
  0x45   :  { %954 = vmatpush3.msra.mxu0 %v101_v10  ;;  %863 = vmatprep.subr.mxu1 %v382_v38  ;;  %v360_v57 = vld [vmem:[#allocation7 + $0x18] sm:$0xff]  ;;  %v359_v60 = vld [vmem:[#allocation7 + $0x10] sm:$0xff]  ;;  %v358_v63 = vld [vmem:[#allocation7 + $0x8] sm:$0xff] }
  0x46   :  { %955 = vmatprep.subr.mxu0 %v100_v11  ;;  %864 = vmatpush3.msra.mxu1 %v366_v39  ;;  %v392_v58 = vld [vmem:[#allocation7 + $0x118] sm:$0xff]  ;;  %v391_v61 = vld [vmem:[#allocation7 + $0x110] sm:$0xff]  ;;  %v390_v0 = vld [vmem:[#allocation7 + $0x108] sm:$0xff] }
  0x47   :  { %956 = vmatpush3.msra.mxu0 %v100_v11  ;;  %865 = vmatprep.subr.mxu1 %v381_v41  ;;  %v373_v1 = vld [vmem:[#allocation7 + $0x80] sm:$0xff] }
  0x48   :  { %957 = vmatprep.subr.mxu0 %v99_v12  ;;  %866 = vmatpush3.msra.mxu1 %v365_v42  ;;  %v357_v2 = vld [vmem:[#allocation7] sm:$0xff] }
  0x49   :  { %958 = vmatpush3.msra.mxu0 %v99_v12  ;;  %867 = vmatprep.subr.mxu1 %v380_v44  ;;  %v389_v3 = vld [vmem:[#allocation7 + $0x100] sm:$0xff] }
  0x4a   :  { %959 = vmatprep.subr.mxu0 %v98_v13  ;;  %868 = vmatpush3.msra.mxu1 %v364_v45  ;;  %v196_v42 = vld [vmem:[%s1331_s2] sm:$0x1] }
  0x4b   :  { %960 = vmatpush3.msra.mxu0 %v98_v13  ;;  %869 = vmatprep.subr.mxu1 %v379_v47 }
  0x4c   :  { %961 = vmatprep.subr.mxu0 %v97_v14  ;;  %870 = vmatpush3.msra.mxu1 %v363_v48 }
  0x4d   :  { %962 = vmatpush3.msra.mxu0 %v97_v14  ;;  %871 = vmatprep.subr.mxu1 %v378_v50 }
  0x4e   :  { %963 = vmatprep.subr.mxu0 %v96_v15  ;;  %872 = vmatpush3.msra.mxu1 %v362_v51 }
  0x4f   :  { %964 = vmatpush3.msra.mxu0 %v96_v15  ;;  %873 = vmatprep.subr.mxu1 %v377_v53 }
  0x50   :  { %965 = vmatprep.subr.mxu0 %v95_v16  ;;  %874 = vmatpush3.msra.mxu1 %v361_v54 }
  0x51   :  { %966 = vmatpush3.msra.mxu0 %v95_v16  ;;  %875 = vmatprep.subr.mxu1 %v376_v56 }
  0x52   :  { %968 = vmatmul.mubr.f32.vlgmr.msra.gmra.mxu0 %v1259_v17  ;;  %973 = vmatprep.subr.mxu0 %v404_v22 }
  0x53   :  { %970 = vmatprep.mubr.f32.mxu0 %v1261_v18  ;;  %974 = vmatpush3.msra.mxu0 %v404_v22 }
  0x54   :  { %975 = vmatprep.subr.mxu0 %v403_v25  ;;  %876 = vmatpush3.msra.mxu1 %v360_v57 }
  0x55   :  { %976 = vmatpush3.msra.mxu0 %v403_v25  ;;  %877 = vmatprep.subr.mxu1 %v375_v59 }
  0x56   :  { %971 = vmatmul.mubr.f32.gmra.mxu0 %v1265_v19  ;;  %977 = vmatprep.subr.mxu0 %v402_v28 }
  0x57   :  { %978 = vmatpush3.msra.mxu0 %v402_v28  ;;  %878 = vmatpush3.msra.mxu1 %v359_v60 }
  0x58   :  { %979 = vmatprep.subr.mxu0 %v401_v31  ;;  %879 = vmatprep.subr.mxu1 %v374_v62 }
  0x59   :  { %980 = vmatpush3.msra.mxu0 %v401_v31  ;;  %880 = vmatpush3.msra.mxu1 %v358_v63 }
  0x5a   :  { %981 = vmatprep.subr.mxu0 %v400_v34  ;;  %881 = vmatprep.subr.mxu1 %v373_v1 }
  0x5b   :  { %982 = vmatpush3.msra.mxu0 %v400_v34  ;;  %882 = vmatpush3.msra.mxu1 %v357_v2 }
  0x5c   :  { %983 = vmatprep.subr.mxu0 %v399_v37 }
  0x5d   :  { %984 = vmatpush3.msra.mxu0 %v399_v37 }
  0x5e   :  { %985 = vmatprep.subr.mxu0 %v398_v40 }
  0x5f   :  { %986 = vmatpush3.msra.mxu0 %v398_v40  ;;  %v231_v40 = vlaneseq }
  0x60   :  { %987 = vmatprep.subr.mxu0 %v397_v43 }
  0x61   :  { %988 = vmatpush3.msra.mxu0 %v397_v43  ;;  %v1268_v41 = vshrl.u32 %v231_v40, 7  ;;  %v634_v40 = vld [vmem:[#allocation8 + $0x8] sm:$0xff] }
  0x62   :  { %989 = vmatprep.subr.mxu0 %v396_v46 }
  0x63   :  { %990 = vmatpush3.msra.mxu0 %v396_v46  ;;  %v1274_v43 = vsub.s32 0, %v1268_v41  ;;  %v197_v46 = vld [vmem:[%s1332_s3] sm:$0x1]  ;;  %v256_v51 = vadd.s32 8, %v1268_v41  ;;  %v263_v56 = vand.u32 15, %v1268_v41  ;;  %v258_v62 = vadd.s32 24, %v1268_v41 }
  0x64   :  { %991 = vmatprep.subr.mxu0 %v395_v49  ;;  %vm319_vm0 = vcmp.lt.s32.totalorder %v1268_v41, 1  ;;  %vm340_vm2 = vcmp.lt.s32.totalorder %v1268_v41, 7 }
  0x65   :  { %992 = vmatpush3.msra.mxu0 %v395_v49  ;;  %vm827_vm1 = vcmp.ne.s32.totalorder %v263_v56, 0 }
  0x66   :  { %993 = vmatprep.subr.mxu0 %v394_v52 }
  0x67   :  { %994 = vmatpush3.msra.mxu0 %v394_v52 }
  0x68   :  { %995 = vmatprep.subr.mxu0 %v393_v55 }
  0x69   :  { %996 = vmatpush3.msra.mxu0 %v393_v55 }
  0x6a   :  { %997 = vmatprep.subr.mxu0 %v392_v58 }
  0x6b   :  { %998 = vmatpush3.msra.mxu0 %v392_v58 }
  0x6c   :  { %999 = vmatprep.subr.mxu0 %v391_v61 }
  0x6d   :  { %1000 = vmatpush3.msra.mxu0 %v391_v61  ;;  %v270_v61 = vand.u32 15, %v256_v51 }
  0x6e   :  { %1001 = vmatprep.subr.mxu0 %v390_v0 }
  0x6f   :  { %1002 = vmatpush3.msra.mxu0 %v390_v0  ;;  %vm829_vm3 = vcmp.ne.s32.totalorder %v270_v61, 15 }
  0x70   :  { %1003 = vmatprep.subr.mxu0 %v389_v3 }
  0x71   :  { %1004 = vmatpush3.msra.mxu0 %v389_v3  ;;  %v257_v3 = vadd.s32 16, %v1268_v41  ;;  %v633_v41 = vld [vmem:[#allocation8] sm:$0xff] }
 0x112   :  { %v969_v5 = vpop.f32.mrf.mxu0 }
 0x113   :  { %v208_v9 = vmul.f32 %v969_v5, %v969_v5 }
 0x114   :  { %v177_v6 = vpop.f32.mrf.mxu0 }
 0x115   :  { %v207_v7 = vmul.f32 %v177_v6, %v177_v6  ;;  %v198_v10 = vadd.f32 %v969_v5, %v177_v6 }
 0x116   :  { %v972_v8 = vpop.f32.mrf.mxu0 }
 0x117   :  { %v211_v12 = vadd.f32 %v208_v9, %v207_v7  ;;  %v210_v15 = vmul.f32 %v972_v8, %v972_v8 }
 0x118   :  { %v187_v11 = vpop.f32.mrf.mxu0 }
 0x119   :  { %v199_v13 = vadd.f32 %v198_v10, %v187_v11  ;;  %v209_v14 = vmul.f32 %v187_v11, %v187_v11 }
 0x11b   :  { %v200_v16 = vadd.f32 %v972_v8, %v199_v13  ;;  %v212_v20 = vadd.f32 %v211_v12, %v209_v14  ;;  %v284_v13 = vand.u32 15, %v258_v62 }
 0x11d   :  { %v201_v21 = vrot.slane %v200_v16, 4  ;;  %v213_v22 = vadd.f32 %v212_v20, %v210_v15  ;;  %vm830_vm4 = vcmp.ne.s32.totalorder %v284_v13, 15 }
 0x11f   :  { %v202_v23 = vadd.f32 %v201_v21, %v200_v16  ;;  %v214_v24 = vrot.slane %v213_v22, 4  ;;  %v277_v16 = vand.u32 15, %v257_v3 }
 0x121   :  { %v203_v25 = vrot.slane %v202_v23, 2  ;;  %v215_v26 = vadd.f32 %v214_v24, %v213_v22  ;;  %vm828_vm5 = vcmp.ne.s32.totalorder %v277_v16, 0 }
 0x123   :  { %v204_v27 = vadd.f32 %v203_v25, %v202_v23  ;;  %v216_v28 = vrot.slane %v215_v26, 2 }
 0x125   :  { %v205_v29 = vrot.slane %v204_v27, 1  ;;  %v217_v30 = vadd.f32 %v216_v28, %v215_v26  ;;  %v648_v26 = vld [vmem:[#allocation8 + $0x78] sm:$0xff]  ;;  %v646_v28 = vld [vmem:[#allocation8 + $0x68] sm:$0xff] }
 0x126   :  { %1011 = vmatprep.subr.mxu1 %v648_v26 }
 0x127   :  { %v206_v31 = vadd.f32 %v205_v29, %v204_v27  ;;  %v218_v32 = vrot.slane %v217_v30, 1  ;;  %v647_v27 = vld [vmem:[#allocation8 + $0x70] sm:$0xff]  ;;  %v645_v29 = vld [vmem:[#allocation8 + $0x60] sm:$0xff] }
 0x129   :  { %v219_v33 = vadd.f32 %v218_v32, %v217_v30  ;;  %v220_v34 = vmul.f32 0.03125, %v206_v31  ;;  %v644_v30 = vld [vmem:[#allocation8 + $0x58] sm:$0xff]  ;;  %v643_v31 = vld [vmem:[#allocation8 + $0x50] sm:$0xff]  ;;  %v642_v32 = vld [vmem:[#allocation8 + $0x48] sm:$0xff] }
 0x12b   :  { %v221_v35 = vmul.f32 0.03125, %v219_v33  ;;  %v222_v36 = vmul.f32 %v220_v34, %v220_v34  ;;  %v641_v33 = vld [vmem:[#allocation8 + $0x40] sm:$0xff] }
 0x12d   :  { %v223_v37 = vsub.f32 %v221_v35, %v222_v36  ;;  %v639_v35 = vld [vmem:[#allocation8 + $0x30] sm:$0xff]  ;;  %v638_v36 = vld [vmem:[#allocation8 + $0x28] sm:$0xff] }
 0x12f   :  { %v224_v38 = vmax.f32 %v223_v37, 0.0  ;;  %v637_v37 = vld [vmem:[#allocation8 + $0x20] sm:$0xff] }
 0x131   :  { %v225_v39 = vadd.f32 1e-05, %v224_v38  ;;  %v636_v38 = vld [vmem:[#allocation8 + $0x18] sm:$0xff] }
 0x133   :  { %1056 = vrsqrt.f32 %v225_v39  ;;  %v635_v39 = vld [vmem:[#allocation8 + $0x10] sm:$0xff] }
 0x140   :  { %v1057_v44 = vpop.eup %1056 }
 0x141   :  { %v227_v45 = vmul.f32 %v1057_v44, %v196_v42 }
 0x143   :  { %v228_v47 = vmul.f32 %v227_v45, %v220_v34  ;;  %v234_v48 = vrot.slane %v227_v45, %v1274_v43  ;;  %v640_v34 = vld [vmem:[#allocation8 + $0x38] sm:$0xff] }
 0x145   :  { %v229_v49 = vsub.f32 %v197_v46, %v228_v47  ;;  %v238_v50 = vmul.f32 %v234_v48, %v187_v11  ;;  %v236_v53 = vmul.f32 %v234_v48, %v177_v6  ;;  %v239_v54 = vmul.f32 %v972_v8, %v234_v48 }
 0x146   :  { %v237_v55 = vmul.f32 %v969_v5, %v234_v48 }
 0x147   :  { %v244_v52 = vrot.slane %v229_v49, %v1274_v43 }
 0x149   :  { %v248_v57 = vadd.f32 %v244_v52, %v238_v50  ;;  %v246_v58 = vadd.f32 %v244_v52, %v236_v53  ;;  %v249_v59 = vadd.f32 %v244_v52, %v239_v54  ;;  %v247_v60 = vadd.f32 %v244_v52, %v237_v55 }
 0x14b   :  { %v252_v63 = vmax.f32 %v248_v57, 0.0  ;;  %v250_v0 = vmax.f32 %v246_v58, 0.0  ;;  %v253_v1 = vmax.f32 %v249_v59, 0.0  ;;  %v251_v2 = vmax.f32 %v247_v60, 0.0 }
 0x14d   :  { %v338_v5 = vrot.slane %v252_v63, 1  ;;  %469 = vmatprep.mubr.f32.mxu1 %v250_v0  ;;  %v315_v6 = vrot.slane %v250_v0, 7  ;;  %v318_v7 = vrot.slane %v253_v1, 7  ;;  %v336_v8 = vrot.slane %v250_v0, 1 }
 0x14e   :  { %v337_v9 = vrot.slane %v251_v2, 1  ;;  %v339_v10 = vrot.slane %v253_v1, 1  ;;  %v316_v12 = vrot.slane %v251_v2, 7  ;;  %v317_v22 = vrot.slane %v252_v63, 7 }
 0x14f   :  { %v323_v11 = vsel %vm319_vm0, %v318_v7, %v315_v6 }
 0x150   :  { %820 = vmatmul.mubr.msk.f32.vlgmr.msra.gmra.mxu1 %vm827_vm1, %v323_v11  ;;  %v343_v14 = vsel %vm340_vm2, %v336_v8, %v337_v9  ;;  %v342_v15 = vsel %vm340_vm2, %v337_v9, %v338_v5  ;;  %v341_v20 = vsel %vm340_vm2, %v338_v5, %v339_v10  ;;  %v322_v21 = vsel %vm319_vm0, %v315_v6, %v316_v12 }
 0x151   :  { %1005 = vmatprep.mubr.f32.mxu0 %v343_v14  ;;  %474 = vmatprep.mubr.f32.mxu1 %v251_v2  ;;  %v344_v23 = vsel %vm340_vm2, %v339_v10, %v336_v8  ;;  %v321_v24 = vsel %vm319_vm0, %v316_v12, %v317_v22  ;;  %v320_v25 = vsel %vm319_vm0, %v317_v22, %v318_v7 }
 0x152   :  { %1006 = vmatmul.mubr.msk.f32.vlgmr.msra.gmra.mxu0 %vm829_vm3, %v342_v15  ;;  %1012 = vmatpush3.msra.mxu1 %v648_v26 }
 0x153   :  { %1008 = vmatprep.mubr.f32.mxu0 %v341_v20  ;;  %1013 = vmatprep.subr.mxu1 %v647_v27 }
 0x154   :  { %475 = vmatmul.mubr.f32.gmra.mxu1 %v322_v21 }
 0x155   :  { %479 = vmatprep.mubr.f32.mxu1 %v252_v63  ;;  %1014 = vmatpush3.msra.mxu1 %v647_v27 }
 0x156   :  { %1009 = vmatmul.mubr.msk.f32.gmra.mxu0 %vm830_vm4, %v344_v23  ;;  %1015 = vmatprep.subr.mxu1 %v646_v28 }
 0x157   :  { %1016 = vmatpush3.msra.mxu1 %v646_v28 }
 0x158   :  { %822 = vmatmul.mubr.msk.f32.gmra.mxu1 %vm828_vm5, %v321_v24  ;;  %1017 = vmatprep.subr.mxu1 %v645_v29 }
 0x159   :  { %484 = vmatprep.mubr.f32.mxu1 %v253_v1  ;;  %1018 = vmatpush3.msra.mxu1 %v645_v29 }
 0x15a   :  { %1019 = vmatprep.subr.mxu1 %v644_v30 }
 0x15b   :  { %1020 = vmatpush3.msra.mxu1 %v644_v30 }
 0x15c   :  { %485 = vmatmul.mubr.f32.gmra.mxu1 %v320_v25  ;;  %1021 = vmatprep.subr.mxu1 %v643_v31 }
 0x15d   :  { %1022 = vmatpush3.msra.mxu1 %v643_v31  ;;  %v575_v31 = vld [vmem:[%s1334_s5] sm:$0x1] }
 0x15e   :  { %1023 = vmatprep.subr.mxu1 %v642_v32 }
 0x15f   :  { %1024 = vmatpush3.msra.mxu1 %v642_v32 }
 0x160   :  { %1025 = vmatprep.subr.mxu1 %v641_v33 }
 0x161   :  { %1026 = vmatpush3.msra.mxu1 %v641_v33 }
 0x162   :  { %1027 = vmatprep.subr.mxu1 %v640_v34 }
 0x163   :  { %1028 = vmatpush3.msra.mxu1 %v640_v34  ;;  %v576_v34 = vld [vmem:[%s1335_s6] sm:$0x1] }
 0x164   :  { %1029 = vmatprep.subr.mxu1 %v639_v35 }
 0x165   :  { %1030 = vmatpush3.msra.mxu1 %v639_v35 }
 0x166   :  { %1031 = vmatprep.subr.mxu1 %v638_v36 }
 0x167   :  { %1032 = vmatpush3.msra.mxu1 %v638_v36 }
 0x168   :  { %1033 = vmatprep.subr.mxu1 %v637_v37 }
 0x169   :  { %1034 = vmatpush3.msra.mxu1 %v637_v37 }
 0x16a   :  { %1035 = vmatprep.subr.mxu1 %v636_v38 }
 0x16b   :  { %1036 = vmatpush3.msra.mxu1 %v636_v38 }
 0x16c   :  { %1037 = vmatprep.subr.mxu1 %v635_v39 }
 0x16d   :  { %1038 = vmatpush3.msra.mxu1 %v635_v39 }
 0x16e   :  { %1039 = vmatprep.subr.mxu1 %v634_v40 }
 0x16f   :  { %1040 = vmatpush3.msra.mxu1 %v634_v40 }
 0x170   :  { %1041 = vmatprep.subr.mxu1 %v633_v41 }
 0x171   :  { %1042 = vmatpush3.msra.mxu1 %v633_v41 }
 0x210   :  { %v883_v42 = vpop.f32.mrf.mxu1 }
 0x212   :  { %v1007_v44 = vpop.f32.mrf.mxu0  ;;  %v884_v45 = vpop.f32.mrf.mxu1 }
 0x213   :  { %v885_v49 = vadd.f32 %v884_v45, %v883_v42 }
 0x214   :  { %v556_v46 = vpop.f32.mrf.mxu0  ;;  %v886_v47 = vpop.f32.mrf.mxu1 }
 0x215   :  { %v557_v55 = vadd.f32 %v885_v49, %v556_v46 }
 0x216   :  { %v887_v48 = vpop.f32.mrf.mxu1  ;;  %v1010_v51 = vpop.f32.mrf.mxu0 }
 0x217   :  { %v888_v50 = vadd.f32 %v887_v48, %v886_v47  ;;  %v586_v62 = vmul.f32 %v557_v55, %v557_v55 }
 0x218   :  { %v889_v52 = vpop.f32.mrf.mxu1  ;;  %v566_v57 = vpop.f32.mrf.mxu0 }
 0x219   :  { %v562_v53 = vadd.f32 %v1007_v44, %v888_v50 }
 0x21a   :  { %v890_v54 = vpop.f32.mrf.mxu1 }
 0x21b   :  { %v891_v56 = vadd.f32 %v890_v54, %v889_v52  ;;  %v587_v59 = vmul.f32 %v562_v53, %v562_v53  ;;  %v577_v63 = vadd.f32 %v562_v53, %v557_v55 }
 0x21c   :  { %v892_v58 = vpop.f32.mrf.mxu1 }
 0x21d   :  { %v567_v60 = vadd.f32 %v891_v56, %v566_v57  ;;  %v590_v2 = vadd.f32 %v587_v59, %v586_v62 }
 0x21e   :  { %v893_v61 = vpop.f32.mrf.mxu1 }
 0x21f   :  { %v588_v0 = vmul.f32 %v567_v60, %v567_v60  ;;  %v894_v1 = vadd.f32 %v893_v61, %v892_v58  ;;  %v578_v3 = vadd.f32 %v577_v63, %v567_v60 }
 0x221   :  { %v572_v5 = vadd.f32 %v1010_v51, %v894_v1  ;;  %v591_v6 = vadd.f32 %v590_v2, %v588_v0 }
 0x223   :  { %v579_v7 = vadd.f32 %v578_v3, %v572_v5  ;;  %v589_v8 = vmul.f32 %v572_v5, %v572_v5 }
 0x225   :  { %v580_v9 = vrot.slane %v579_v7, 4  ;;  %v592_v10 = vadd.f32 %v591_v6, %v589_v8 }
 0x227   :  { %v581_v11 = vadd.f32 %v580_v9, %v579_v7  ;;  %v593_v12 = vrot.slane %v592_v10, 4 }
 0x229   :  { %v582_v13 = vrot.slane %v581_v11, 2  ;;  %v594_v14 = vadd.f32 %v593_v12, %v592_v10 }
 0x22b   :  { %v583_v15 = vadd.f32 %v582_v13, %v581_v11  ;;  %v595_v16 = vrot.slane %v594_v14, 2 }
 0x22d   :  { %v584_v20 = vrot.slane %v583_v15, 1  ;;  %v596_v21 = vadd.f32 %v595_v16, %v594_v14 }
 0x22f   :  { %v585_v22 = vadd.f32 %v584_v20, %v583_v15  ;;  %v597_v23 = vrot.slane %v596_v21, 1 }
 0x231   :  { %v598_v24 = vadd.f32 %v597_v23, %v596_v21  ;;  %v599_v25 = vmul.f32 0.03125, %v585_v22 }
 0x233   :  { %v600_v26 = vmul.f32 0.03125, %v598_v24  ;;  %v601_v27 = vmul.f32 %v599_v25, %v599_v25  ;;  %v734_v24 = vld [vmem:[%s1337_s8] sm:$0x1]  ;;  %s1176_s8 = smov [#allocation10]  }
 0x234   :  { %s805_s21 = sshll.u32 %s1176_s8, 4  ;;  %s806_s21 = int_to_ptr.vmem [resolvable:$true] %s805_s21 }
 0x235   :  { %v602_v28 = vsub.f32 %v600_v26, %v601_v27  ;;  %v735_v27 = vld [vmem:[%s1338_s9] sm:$0x1]  ;;  %s1142_s9 = scalar_lea.vmem %s806_s21, 512  ;;  %p1147_p7 = scmp.lt.s32.totalorder %s806_s21, %s806_s21 }
 0x236   :  { %p1143_p6 = scmp.ne.s32.totalorder %s806_s21, %s1142_s9  ;;  %p1148_p8 = scmp.lt.s32.totalorder %s1142_s9, %s1142_s9 }
 0x237   :  { %v603_v29 = vmax.f32 %v602_v28, 0.0 }
 0x238   :  { %p1149_p9 = por %p1148_p8, %p1147_p7 }
 0x239   :  { %v604_v30 = vadd.f32 1e-05, %v603_v29 }
 0x23a   :  { %p1150_p10 = pnand %p1149_p9, %p1143_p6 }
 0x23b   :  { %1058 = vrsqrt.f32 %v604_v30 }
 0x248   :  { %v1059_v32 = vpop.eup %1058 }
 0x249   :  { %v606_v33 = vmul.f32 %v1059_v32, %v575_v31 }
 0x24b   :  { %v607_v35 = vmul.f32 %v606_v33, %v599_v25  ;;  %v613_v36 = vrot.slane %v606_v33, %v1274_v43 }
 0x24d   :  { %v608_v37 = vsub.f32 %v576_v34, %v607_v35  ;;  %v615_v38 = vmul.f32 %v613_v36, %v557_v55  ;;  %v616_v40 = vmul.f32 %v613_v36, %v562_v53  ;;  %v617_v41 = vmul.f32 %v613_v36, %v567_v60 }
 0x24e   :  { %v618_v46 = vmul.f32 %v613_v36, %v572_v5 }
 0x24f   :  { %v623_v39 = vrot.slane %v608_v37, %v1274_v43 }
 0x251   :  { %v625_v42 = vadd.f32 %v623_v39, %v615_v38  ;;  %v626_v44 = vadd.f32 %v623_v39, %v616_v40  ;;  %v627_v45 = vadd.f32 %v623_v39, %v617_v41  ;;  %v628_v49 = vadd.f32 %v623_v39, %v618_v46 }
 0x253   :  { %v629_v47 = vmax.f32 %v625_v42, 0.0  ;;  %v630_v48 = vmax.f32 %v626_v44, 0.0  ;;  %v631_v50 = vmax.f32 %v627_v45, 0.0  ;;  %v632_v51 = vmax.f32 %v628_v49, 0.0 }
 0x255   :  { %1043 = vmatprep.mubr.f32.mxu1 %v629_v47 }
 0x256   :  { %1044 = vmatmul.mubr.f32.vlgmr.msra.gmra.mxu1 %v630_v48 }
 0x257   :  { %1046 = vmatprep.mubr.f32.mxu1 %v631_v50 }
 0x25a   :  { %1047 = vmatmul.mubr.f32.gmra.mxu1 %v632_v51 }
 0x316   :  { %v1045_v52 = vpop.f32.mrf.mxu1 }
 0x317   :  { %v746_v57 = vmul.f32 %v1045_v52, %v1045_v52 }
 0x318   :  { %v715_v54 = vpop.f32.mrf.mxu1 }
 0x319   :  { %v745_v55 = vmul.f32 %v715_v54, %v715_v54  ;;  %v736_v53 = vadd.f32 %v1045_v52, %v715_v54 }
 0x31a   :  { %v1048_v56 = vpop.f32.mrf.mxu1 }
 0x31b   :  { %v749_v59 = vadd.f32 %v746_v57, %v745_v55  ;;  %v748_v62 = vmul.f32 %v1048_v56, %v1048_v56 }
 0x31c   :  { %v725_v58 = vpop.f32.mrf.mxu1 }
 0x31d   :  { %v737_v60 = vadd.f32 %v736_v53, %v725_v58  ;;  %v747_v61 = vmul.f32 %v725_v58, %v725_v58 }
 0x31f   :  { %v738_v63 = vadd.f32 %v1048_v56, %v737_v60  ;;  %v750_v0 = vadd.f32 %v749_v59, %v747_v61 }
 0x321   :  { %v739_v1 = vrot.slane %v738_v63, 4  ;;  %v751_v2 = vadd.f32 %v750_v0, %v748_v62 }
 0x323   :  { %v740_v3 = vadd.f32 %v739_v1, %v738_v63  ;;  %v752_v5 = vrot.slane %v751_v2, 4 }
 0x325   :  { %v741_v6 = vrot.slane %v740_v3, 2  ;;  %v753_v7 = vadd.f32 %v752_v5, %v751_v2 }
 0x327   :  { %v742_v8 = vadd.f32 %v741_v6, %v740_v3  ;;  %v754_v9 = vrot.slane %v753_v7, 2 }
 0x329   :  { %v743_v10 = vrot.slane %v742_v8, 1  ;;  %v755_v11 = vadd.f32 %v754_v9, %v753_v7 }
 0x32b   :  { %v744_v12 = vadd.f32 %v743_v10, %v742_v8  ;;  %v756_v13 = vrot.slane %v755_v11, 1 }
 0x32d   :  { %v757_v14 = vadd.f32 %v756_v13, %v755_v11  ;;  %v758_v15 = vmul.f32 0.03125, %v744_v12 }
 0x32f   :  { %v759_v16 = vmul.f32 0.03125, %v757_v14  ;;  %v760_v20 = vmul.f32 %v758_v15, %v758_v15 }
 0x331   :  { %v761_v21 = vsub.f32 %v759_v16, %v760_v20 }
 0x333   :  { %v762_v22 = vmax.f32 %v761_v21, 0.0 }
 0x335   :  { %v763_v23 = vadd.f32 1e-05, %v762_v22 }
 0x337   :  { %1060 = vrsqrt.f32 %v763_v23 }
 0x344   :  { %v1061_v25 = vpop.eup %1060 }
 0x345   :  { %v765_v26 = vmul.f32 %v1061_v25, %v734_v24 }
 0x347   :  { %v766_v28 = vmul.f32 %v765_v26, %v758_v15  ;;  %v772_v29 = vrot.slane %v765_v26, %v1274_v43 }
 0x349   :  { %v767_v30 = vsub.f32 %v735_v27, %v766_v28  ;;  %v776_v31 = vmul.f32 %v772_v29, %v725_v58  ;;  %v774_v33 = vmul.f32 %v772_v29, %v715_v54  ;;  %v775_v34 = vmul.f32 %v1045_v52, %v772_v29 }
 0x34a   :  { %v777_v35 = vmul.f32 %v1048_v56, %v772_v29 }
 0x34b   :  { %v782_v32 = vrot.slane %v767_v30, %v1274_v43 }
 0x34d   :  { %v786_v36 = vadd.f32 %v782_v32, %v776_v31  ;;  %v784_v37 = vadd.f32 %v782_v32, %v774_v33  ;;  %v785_v38 = vadd.f32 %v782_v32, %v775_v34  ;;  %v787_v39 = vadd.f32 %v782_v32, %v777_v35 }
 0x34f   :  { %v790_v40 = vadd.f32 %v786_v36, %v1261_v18  ;;  %v788_v41 = vadd.f32 %v784_v37, %v1256_v4  ;;  %v789_v42 = vadd.f32 %v785_v38, %v1259_v17  ;;  %v791_v44 = vadd.f32 %v787_v39, %v1265_v19 }
 0x351   :  { %v794_v45 = vmax.f32 %v790_v40, 0.0  ;;  %v792_v46 = vmax.f32 %v788_v41, 0.0  ;;  %v793_v43 = vmax.f32 %v789_v42, 0.0  ;;  %v795_v47 = vmax.f32 %v791_v44, 0.0 }
 0x353   :  { %798 = vst [vmem:[#allocation10 + $0x10] sm:$0xff] %v794_v45  ;;  %796 = vst [vmem:[#allocation10] sm:$0xff] %v792_v46 }
 0x354   :  { %797 = vst [vmem:[#allocation10 + $0x8] sm:$0xff] %v793_v43  ;;  %799 = vst [vmem:[#allocation10 + $0x18] sm:$0xff] %v795_v47 }
 0x355   :  { %1153 = shalt.err (!%p1150_p10)
}
 0x356   :  { %811 = dma.vmem_to_hbm [thread:$0]  %s806_s21, 512, %s1339_s10, [#allocation4], %s1172_s18, %s1172_s18, %s1173_s19  }
 0x357   :  { %1168 = dma.done.wait [#allocation4], 512  }
 0x358   :  { %1169 = vsyncadd [#allocation4], 4294966784 }
 0x359   :  { %815 = vsyncpa [#allocation3], 1 }
 0x35a   :  { %816 = vsyncpa [#allocation6], 1 }
 0x35b   :  { %817 = vsyncpa [#allocation9], 1 }
 0x35c   :  { %818 = vsyncpa [#allocation4], 1 }

</bundles_post_ra>
